<compile_context>
chip_gen: v6e
topology: v6e:2x2x1
jax: 0.10.0
libtpu: 0.0.40
codegen_flags: <defaults>
</compile_context>

<pallas_src>
import jax
import jax.numpy as jnp
from jax.experimental import pallas as pl
from jax.experimental.pallas import tpu as pltpu


# ----------------------------------------------------------------------------
# Fused bottleneck kernel: one grid step == one batch image.
# ----------------------------------------------------------------------------
def _bottleneck_kernel(x_ref, w1_ref, b1_ref, w2_ref, b2_ref, w3_ref, b3_ref,
                       out_ref, pad_ref):
    # x_ref:   (1, H, W*C_in)           lane-dense input tile
    # w1_ref:  (W*C_in,  W*C_mid)       BN1-scaled block-diag 1x1 weights
    # w2_ref:  (3, W*C_mid, W*C_mid)    BN2-scaled banded 3x3 weights (per kh)
    # w3_ref:  (W*C_mid, W*C_out)       BN3-scaled block-diag 1x1 weights
    # b*_ref:  (1, W*C_*)               folded BN shifts (lane-broadcast)
    # out_ref: (1, H, W*C_out)          lane-dense output tile
    # pad_ref: VMEM scratch (H+2, W*C_mid) -- H-halo for the 3x3 conv
    H = x_ref.shape[1]
    x = x_ref[0]                                                   # (H, W*C_in)

    # conv1 (1x1) + BN1  -> one matmul, M=H, K=W*C_in, N=W*C_mid
    y1 = jnp.dot(x, w1_ref[...],
                 preferred_element_type=jnp.float32) + b1_ref[...]

    # 3x3 conv halo handled in-kernel: zero scratch, write rows 1..H.
    pad_ref[...] = jnp.zeros_like(pad_ref)
    pad_ref[pl.ds(1, H), :] = y1

    # conv2 (3x3, pad=1) + BN2 -> 3 banded matmuls (kw taps + W padding are
    # folded into w2_ref[kh]); kh shifts are overlapping row windows of pad_ref.
    acc = jnp.zeros((H, pad_ref.shape[1]), jnp.float32)
    for kh in range(3):                       # unrolled at trace time
        acc = acc + jnp.dot(pad_ref[pl.ds(kh, H), :], w2_ref[kh],
                            preferred_element_type=jnp.float32)
    y2 = acc + b2_ref[...]

    # conv3 (1x1) + BN3 -> one matmul, then identity residual + ReLU epilogue.
    y3 = jnp.dot(y2, w3_ref[...],
                 preferred_element_type=jnp.float32) + b3_ref[...]
    out_ref[0] = jnp.maximum(y3 + x, 0.0).astype(out_ref.dtype)


def residual_bottleneck_forward(kp, x_nchw):
    """NCHW in / NCHW out, like the PyTorch module (stride=1, identity skip)."""
    # TODO(synk): stride>1 and the optional `downsample` branch are not
    # implemented (module defaults: stride=1, downsample=None).
    N, C_in, H, W = x_nchw.shape
    wc_in = kp["W1"].shape[0]
    wc_mid = kp["W1"].shape[1]
    wc_out = kp["W3"].shape[1]
    assert wc_in == W * C_in and wc_out == wc_in  # identity residual

    # NCHW -> (N, H, W*C) lane-dense slab (reshape after transpose is free).
    x2d = jnp.transpose(x_nchw, (0, 2, 3, 1)).reshape(N, H, W * C_in)

    out2d = pl.pallas_call(
        _bottleneck_kernel,
        out_shape=jax.ShapeDtypeStruct((N, H, wc_out), x_nchw.dtype),
        grid=(N,),
        in_specs=[
            pl.BlockSpec((1, H, wc_in), lambda n: (n, 0, 0)),
            pl.BlockSpec(kp["W1"].shape, lambda n: (0, 0)),
            pl.BlockSpec(kp["b1"].shape, lambda n: (0, 0)),
            pl.BlockSpec(kp["W2"].shape, lambda n: (0, 0, 0)),
            pl.BlockSpec(kp["b2"].shape, lambda n: (0, 0)),
            pl.BlockSpec(kp["W3"].shape, lambda n: (0, 0)),
            pl.BlockSpec(kp["b3"].shape, lambda n: (0, 0)),
        ],
        out_specs=pl.BlockSpec((1, H, wc_out), lambda n: (n, 0, 0)),
        scratch_shapes=[pltpu.VMEM((H + 2, wc_mid), jnp.float32)],
        compiler_params=pltpu.CompilerParams(
            dimension_semantics=("parallel",)),
    )(x2d, kp["W1"], kp["b1"], kp["W2"], kp["b2"], kp["W3"], kp["b3"])

    return jnp.transpose(out2d.reshape(N, H, W, C_in), (0, 3, 1, 2))


# ----------------------------------------------------------------------------
# Parameter preparation: fold eval-mode BN into block-structured weights.
# ----------------------------------------------------------------------------
def _fold_bn(gamma, beta, mean, var, eps=1e-5):
    # TODO(synk): eval-mode running statistics only; training-mode batch stats
    # are not computed in-kernel.
    scale = gamma / jnp.sqrt(var + eps)
    shift = beta - mean * scale
    return scale, shift


def build_kernel_params(params, W):
    w1, w2, w3 = params["w1"], params["w2"], params["w3"]   # OIHW, bias=False
    c_mid = w1.shape[0]
    eye = jnp.eye(W, dtype=jnp.float32)

    s1, t1 = _fold_bn(*params["bn1"])
    W1 = jnp.kron(eye, w1[:, :, 0, 0].T) * jnp.tile(s1, W)[None, :]
    b1 = jnp.tile(t1, W)[None, :]

    s2, t2 = _fold_bn(*params["bn2"])
    w2k = []
    for kh in range(3):
        bk = jnp.zeros((W * c_mid, W * c_mid), jnp.float32)
        for kw in range(3):
            shift_eye = jnp.eye(W, W, k=1 - kw, dtype=jnp.float32)
            bk = bk + jnp.kron(shift_eye, w2[:, :, kh, kw].T)
        w2k.append(bk * jnp.tile(s2, W)[None, :])
    W2 = jnp.stack(w2k, axis=0)
    b2 = jnp.tile(t2, W)[None, :]

    s3, t3 = _fold_bn(*params["bn3"])
    W3 = jnp.kron(eye, w3[:, :, 0, 0].T) * jnp.tile(s3, W)[None, :]
    b3 = jnp.tile(t3, W)[None, :]

    return dict(W1=W1, b1=b1, W2=W2, b2=b2, W3=W3, b3=b3)


def init_params(key, c_in, n_filters):
    c_mid = n_filters
    c_out = n_filters * 4
    assert c_out == c_in, "identity residual requires in_channels == 4*n_filters"
    k = jax.random.split(key, 6)

    def bn_init(kk, c):
        kg, kb, km, kv = jax.random.split(kk, 4)
        gamma = 1.0 + 0.1 * jax.random.normal(kg, (c,), jnp.float32)
        beta = 0.05 * jax.random.normal(kb, (c,), jnp.float32)
        mean = 0.1 * jax.random.normal(km, (c,), jnp.float32)
        var = 1.0 + 0.1 * jax.random.uniform(kv, (c,), jnp.float32)
        return (gamma, beta, mean, var)

    w1 = jax.random.normal(k[0], (c_mid, c_in, 1, 1), jnp.float32) / jnp.sqrt(c_in)
    w2 = jax.random.normal(k[1], (c_mid, c_mid, 3, 3), jnp.float32) / jnp.sqrt(9.0 * c_mid)
    w3 = jax.random.normal(k[2], (c_out, c_mid, 1, 1), jnp.float32) / jnp.sqrt(c_mid)
    return dict(w1=w1, w2=w2, w3=w3,
                bn1=bn_init(k[3], c_mid), bn2=bn_init(k[4], c_mid),
                bn3=bn_init(k[5], c_out))


# ----------------------------------------------------------------------------
# Pure-JAX reference (matches the PyTorch module forward, eval-mode BN).
# ----------------------------------------------------------------------------
def ref_forward(params, x):
    def convbn(h, w, bn, padding):
        y = jax.lax.conv_general_dilated(
            h, w, window_strides=(1, 1), padding=padding,
            dimension_numbers=("NCHW", "OIHW", "NCHW"),
            precision=jax.lax.Precision.HIGHEST)
        scale, shift = _fold_bn(*bn)
        return y * scale[None, :, None, None] + shift[None, :, None, None]

    out = convbn(x, params["w1"], params["bn1"], ((0, 0), (0, 0)))
    out = convbn(out, params["w2"], params["bn2"], ((1, 1), (1, 1)))
    out = convbn(out, params["w3"], params["bn3"], ((0, 0), (0, 0)))
    return jnp.maximum(out + x, 0.0)       # residual add + ReLU


if __name__ == "__main__":
    key = jax.random.PRNGKey(0)
    kx, kp = jax.random.split(key)
    N, C_in, H, W = 2, 16, 16, 16
    n_filters = 4                      # expansion=4 -> out channels = 16 = C_in

    x = jax.random.normal(kx, (N, C_in, H, W), jnp.float32)
    params = init_params(kp, C_in, n_filters)
    kparams = build_kernel_params(params, W)

    fwd = jax.jit(residual_bottleneck_forward)
    out = fwd(kparams, x)
    jax.block_until_ready(out)

    ref = ref_forward(params, x)
    assert out.shape == (N, C_in, H, W)
    assert bool(jnp.allclose(out, ref, atol=1e-3, rtol=1e-3))

    print("KERNEL_OK")
</pallas_src>

<mosaic_0001>
module attributes {stable_mosaic.version = 11 : i64} {
  func.func @_bottleneck_kernel(%arg0: i32, %arg1: memref<1x16x256xf32, #tpu.memory_space<vmem>>, %arg2: memref<256x64xf32, #tpu.memory_space<vmem>>, %arg3: memref<1x64xf32, #tpu.memory_space<vmem>>, %arg4: memref<3x64x64xf32, #tpu.memory_space<vmem>>, %arg5: memref<1x64xf32, #tpu.memory_space<vmem>>, %arg6: memref<64x256xf32, #tpu.memory_space<vmem>>, %arg7: memref<1x256xf32, #tpu.memory_space<vmem>>, %arg8: memref<1x16x256xf32, #tpu.memory_space<vmem>>, %arg9: memref<18x64xf32, #tpu.memory_space<vmem>>) attributes {dimension_semantics = [#tpu.dimension_semantics<parallel>], iteration_bounds = array<i64: 2>, scalar_prefetch = 0 : i64, scratch_operands = 1 : i64, tpu.core_type = #tpu.core_type<tc>, window_params = [{transform_indices = @transform_0, window_bounds = array<i64: 1, 16, 256>}, {pipeline_mode = #tpu.pipeline_mode<synchronous>, transform_indices = @transform_1, window_bounds = array<i64: 256, 64>}, {pipeline_mode = #tpu.pipeline_mode<synchronous>, transform_indices = @transform_2, window_bounds = array<i64: 1, 64>}, {pipeline_mode = #tpu.pipeline_mode<synchronous>, transform_indices = @transform_3, window_bounds = array<i64: 3, 64, 64>}, {pipeline_mode = #tpu.pipeline_mode<synchronous>, transform_indices = @transform_4, window_bounds = array<i64: 1, 64>}, {pipeline_mode = #tpu.pipeline_mode<synchronous>, transform_indices = @transform_5, window_bounds = array<i64: 64, 256>}, {pipeline_mode = #tpu.pipeline_mode<synchronous>, transform_indices = @transform_6, window_bounds = array<i64: 1, 256>}, {transform_indices = @transform_7, window_bounds = array<i64: 1, 16, 256>}]} {
    %c0 = arith.constant 0 : index
    %c0_0 = arith.constant 0 : index
    %c0_1 = arith.constant 0 : index
    %0 = vector.load %arg1[%c0, %c0_0, %c0_1] : memref<1x16x256xf32, #tpu.memory_space<vmem>>, vector<1x16x256xf32>
    %1 = vector.shape_cast %0 : vector<1x16x256xf32> to vector<16x256xf32>
    %c0_2 = arith.constant 0 : index
    %c0_3 = arith.constant 0 : index
    %2 = vector.load %arg2[%c0_2, %c0_3] : memref<256x64xf32, #tpu.memory_space<vmem>>, vector<256x64xf32>
    %cst = arith.constant dense<0.000000e+00> : vector<16x64xf32>
    %3 = tpu.matmul %1, %2, %cst {dimension_numbers = #tpu.dot_dimension_numbers<[1], [0], [0], [1], [0, 0, 1, 1], [], []>} : vector<16x256xf32>, vector<256x64xf32>, vector<16x64xf32> -> vector<16x64xf32>
    %c0_4 = arith.constant 0 : index
    %c0_5 = arith.constant 0 : index
    %4 = vector.load %arg3[%c0_4, %c0_5] : memref<1x64xf32, #tpu.memory_space<vmem>>, vector<1x64xf32>
    %5 = vector.broadcast %4 : vector<1x64xf32> to vector<16x64xf32>
    %6 = arith.addf %3, %5 : vector<16x64xf32>
    %cst_6 = arith.constant 0.000000e+00 : f32
    %7 = vector.broadcast %cst_6 : f32 to vector<18x64xf32>
    %c0_7 = arith.constant 0 : index
    %c0_8 = arith.constant 0 : index
    %8 = vector.load %arg9[%c0_7, %c0_8] : memref<18x64xf32, #tpu.memory_space<vmem>>, vector<18x64xf32>
    tpu.vector_store %arg9[%c0_7, %c0_8], %7 {strides = array<i32>} : memref<18x64xf32, #tpu.memory_space<vmem>>, vector<18x64xf32>,
    %c1 = arith.constant 1 : index
    %c0_9 = arith.constant 0 : index
    %9 = vector.load %arg9[%c1, %c0_9] : memref<18x64xf32, #tpu.memory_space<vmem>>, vector<16x64xf32>
    tpu.vector_store %arg9[%c1, %c0_9], %6 {strides = array<i32>} : memref<18x64xf32, #tpu.memory_space<vmem>>, vector<16x64xf32>,
    %cst_10 = arith.constant 0.000000e+00 : f32
    %10 = vector.broadcast %cst_10 : f32 to vector<16x64xf32>
    %c0_11 = arith.constant 0 : index
    %c0_12 = arith.constant 0 : index
    %11 = vector.load %arg9[%c0_11, %c0_12] : memref<18x64xf32, #tpu.memory_space<vmem>>, vector<16x64xf32>
    %c0_13 = arith.constant 0 : index
    %c0_14 = arith.constant 0 : index
    %c0_15 = arith.constant 0 : index
    %12 = vector.load %arg4[%c0_13, %c0_14, %c0_15] : memref<3x64x64xf32, #tpu.memory_space<vmem>>, vector<1x64x64xf32>
    %13 = vector.shape_cast %12 : vector<1x64x64xf32> to vector<64x64xf32>
    %cst_16 = arith.constant dense<0.000000e+00> : vector<16x64xf32>
    %14 = tpu.matmul %11, %13, %cst_16 {dimension_numbers = #tpu.dot_dimension_numbers<[1], [0], [0], [1], [0, 0, 1, 1], [], []>} : vector<16x64xf32>, vector<64x64xf32>, vector<16x64xf32> -> vector<16x64xf32>
    %15 = arith.addf %10, %14 : vector<16x64xf32>
    %c1_17 = arith.constant 1 : index
    %c0_18 = arith.constant 0 : index
    %16 = vector.load %arg9[%c1_17, %c0_18] : memref<18x64xf32, #tpu.memory_space<vmem>>, vector<16x64xf32>
    %c1_19 = arith.constant 1 : index
    %c0_20 = arith.constant 0 : index
    %c0_21 = arith.constant 0 : index
    %17 = vector.load %arg4[%c1_19, %c0_20, %c0_21] : memref<3x64x64xf32, #tpu.memory_space<vmem>>, vector<1x64x64xf32>
    %18 = vector.shape_cast %17 : vector<1x64x64xf32> to vector<64x64xf32>
    %cst_22 = arith.constant dense<0.000000e+00> : vector<16x64xf32>
    %19 = tpu.matmul %16, %18, %cst_22 {dimension_numbers = #tpu.dot_dimension_numbers<[1], [0], [0], [1], [0, 0, 1, 1], [], []>} : vector<16x64xf32>, vector<64x64xf32>, vector<16x64xf32> -> vector<16x64xf32>
    %20 = arith.addf %15, %19 : vector<16x64xf32>
    %c2 = arith.constant 2 : index
    %c0_23 = arith.constant 0 : index
    %21 = vector.load %arg9[%c2, %c0_23] : memref<18x64xf32, #tpu.memory_space<vmem>>, vector<16x64xf32>
    %c2_24 = arith.constant 2 : index
    %c0_25 = arith.constant 0 : index
    %c0_26 = arith.constant 0 : index
    %22 = vector.load %arg4[%c2_24, %c0_25, %c0_26] : memref<3x64x64xf32, #tpu.memory_space<vmem>>, vector<1x64x64xf32>
    %23 = vector.shape_cast %22 : vector<1x64x64xf32> to vector<64x64xf32>
    %cst_27 = arith.constant dense<0.000000e+00> : vector<16x64xf32>
    %24 = tpu.matmul %21, %23, %cst_27 {dimension_numbers = #tpu.dot_dimension_numbers<[1], [0], [0], [1], [0, 0, 1, 1], [], []>} : vector<16x64xf32>, vector<64x64xf32>, vector<16x64xf32> -> vector<16x64xf32>
    %25 = arith.addf %20, %24 : vector<16x64xf32>
    %c0_28 = arith.constant 0 : index
    %c0_29 = arith.constant 0 : index
    %26 = vector.load %arg5[%c0_28, %c0_29] : memref<1x64xf32, #tpu.memory_space<vmem>>, vector<1x64xf32>
    %27 = vector.broadcast %26 : vector<1x64xf32> to vector<16x64xf32>
    %28 = arith.addf %25, %27 : vector<16x64xf32>
    %c0_30 = arith.constant 0 : index
    %c0_31 = arith.constant 0 : index
    %29 = vector.load %arg6[%c0_30, %c0_31] : memref<64x256xf32, #tpu.memory_space<vmem>>, vector<64x256xf32>
    %cst_32 = arith.constant dense<0.000000e+00> : vector<16x256xf32>
    %30 = tpu.matmul %28, %29, %cst_32 {dimension_numbers = #tpu.dot_dimension_numbers<[1], [0], [0], [1], [0, 0, 1, 1], [], []>} : vector<16x64xf32>, vector<64x256xf32>, vector<16x256xf32> -> vector<16x256xf32>
    %c0_33 = arith.constant 0 : index
    %c0_34 = arith.constant 0 : index
    %31 = vector.load %arg7[%c0_33, %c0_34] : memref<1x256xf32, #tpu.memory_space<vmem>>, vector<1x256xf32>
    %32 = vector.broadcast %31 : vector<1x256xf32> to vector<16x256xf32>
    %33 = arith.addf %30, %32 : vector<16x256xf32>
    %34 = arith.addf %33, %1 : vector<16x256xf32>
    %cst_35 = arith.constant 0.000000e+00 : f32
    %35 = vector.broadcast %cst_35 : f32 to vector<16x256xf32>
    %36 = arith.maximumf %34, %35 : vector<16x256xf32>
    %c0_36 = arith.constant 0 : index
    %c0_37 = arith.constant 0 : index
    %c0_38 = arith.constant 0 : index
    %37 = vector.load %arg8[%c0_36, %c0_37, %c0_38] : memref<1x16x256xf32, #tpu.memory_space<vmem>>, vector<1x16x256xf32>
    %38 = vector.shape_cast %37 : vector<1x16x256xf32> to vector<16x256xf32>
    %39 = vector.shape_cast %36 : vector<16x256xf32> to vector<1x16x256xf32>
    tpu.vector_store %arg8[%c0_36, %c0_37, %c0_38], %39 {strides = array<i32>} : memref<1x16x256xf32, #tpu.memory_space<vmem>>, vector<1x16x256xf32>,
    return
  }
  func.func @transform_0(%arg0: i32) -> (i32, i32, i32) {
    %c0_i32 = arith.constant 0 : i32
    %c0_i32_0 = arith.constant 0 : i32
    %c0_i32_1 = arith.constant 0 : i32
    return %arg0, %c0_i32, %c0_i32_0 : i32, i32, i32
  }
  func.func @transform_1(%arg0: i32) -> (i32, i32) {
    %c0_i32 = arith.constant 0 : i32
    %c0_i32_0 = arith.constant 0 : i32
    %c0_i32_1 = arith.constant 0 : i32
    return %c0_i32, %c0_i32_0 : i32, i32
  }
  func.func @transform_2(%arg0: i32) -> (i32, i32) {
    %c0_i32 = arith.constant 0 : i32
    %c0_i32_0 = arith.constant 0 : i32
    %c0_i32_1 = arith.constant 0 : i32
    return %c0_i32, %c0_i32_0 : i32, i32
  }
  func.func @transform_3(%arg0: i32) -> (i32, i32, i32) {
    %c0_i32 = arith.constant 0 : i32
    %c0_i32_0 = arith.constant 0 : i32
    %c0_i32_1 = arith.constant 0 : i32
    %c0_i32_2 = arith.constant 0 : i32
    return %c0_i32, %c0_i32_0, %c0_i32_1 : i32, i32, i32
  }
  func.func @transform_4(%arg0: i32) -> (i32, i32) {
    %c0_i32 = arith.constant 0 : i32
    %c0_i32_0 = arith.constant 0 : i32
    %c0_i32_1 = arith.constant 0 : i32
    return %c0_i32, %c0_i32_0 : i32, i32
  }
  func.func @transform_5(%arg0: i32) -> (i32, i32) {
    %c0_i32 = arith.constant 0 : i32
    %c0_i32_0 = arith.constant 0 : i32
    %c0_i32_1 = arith.constant 0 : i32
    return %c0_i32, %c0_i32_0 : i32, i32
  }
  func.func @transform_6(%arg0: i32) -> (i32, i32) {
    %c0_i32 = arith.constant 0 : i32
    %c0_i32_0 = arith.constant 0 : i32
    %c0_i32_1 = arith.constant 0 : i32
    return %c0_i32, %c0_i32_0 : i32, i32
  }
  func.func @transform_7(%arg0: i32) -> (i32, i32, i32) {
    %c0_i32 = arith.constant 0 : i32
    %c0_i32_0 = arith.constant 0 : i32
    %c0_i32_1 = arith.constant 0 : i32
    return %arg0, %c0_i32, %c0_i32_0 : i32, i32, i32
  }
}

</mosaic_0001>

<bundles_post_ra>
// kernel: residual_bottleneck_forward.1
= control target key start
LH: loop header
LB: loop body
LE: loop exit
PB: predicated region body
PF: predicated region fallthrough
CT: control target
= control target key end

     0   :  { %s1090_s24 = smov 0   ;;  %s1378_s0 = inlined_call_operand.vmem [shape: f32[2,16,256], index: 0, kind: input, shape index: {}]   ;;  %s1379_s1 = inlined_call_operand.vmem [shape: f32[256,64], index: 1, kind: input, shape index: {}]   ;;  %s1380_s2 = inlined_call_operand.vmem [shape: f32[1,64], index: 2, kind: input, shape index: {}]   ;;  %s1381_s3 = inlined_call_operand.vmem [shape: f32[3,64,64], index: 3, kind: input, shape index: {}]   ;;  %s1382_s4 = inlined_call_operand.vmem [shape: f32[1,64], index: 4, kind: input, shape index: {}]   ;;  %s1383_s5 = inlined_call_operand.vmem [shape: f32[64,256], index: 5, kind: input, shape index: {}]   ;;  %s1384_s6 = inlined_call_operand.vmem [shape: f32[1,256], index: 6, kind: input, shape index: {}]   ;;  %s1385_s7 = inlined_call_operand.vmem [shape: f32[2,16,256], index: 7, kind: output, shape index: {}]  }
   0x1 LB: > { %s868_s25 = sadd.s32 4294967295, %s1047_s24   ;;  %p872_p0 = scmp.ge.s32.totalorder %s1047_s24, 1  ;;  %s1047_s24 = sphi %s1090_s24, %s17_s24  }
   0x2   : > { %p237_p1 = scmp.lt.s32.totalorder %s1047_s24, 3 }
   0x4   : > { %p238_p2 = pnand %p872_p0, %p237_p1 }
   0x5   : > { %p269_p3 = scmp.lt.s32.totalorder (!%p238_p2), %s868_s25, 1 }
   0x6   : > { %241 = sbr.rel (%p238_p2) target bundleno = 678 (0x2a6), region = 48 }
   0xb   : > { %v314_v0 = vld [vmem:[%s1379_s1 + $0xf8] sm:$0xff]  ;;  %v313_v2 = vld [vmem:[%s1379_s1 + $0xf0] sm:$0xff]  ;;  %v312_v4 = vld [vmem:[%s1379_s1 + $0xe8] sm:$0xff]  ;;  %s1387_s25 = smov (!%p269_p3, %s868_s25), 1  ;;  %vm397_vm0 = vcmask 523264   ;;  %v1049_v41 = vmov 0.0  }
   0xc   : > { %v298_v1 = vld [vmem:[%s1379_s1 + $0x78] sm:$0xff]  ;;  %907 = vmatprep.subr.mxu0 %v314_v0  ;;  %v297_v3 = vld [vmem:[%s1379_s1 + $0x70] sm:$0xff]  ;;  %v296_v5 = vld [vmem:[%s1379_s1 + $0x68] sm:$0xff]  ;;  %s905_s17 = sshll.u32 %s1387_s25, 5  ;;  %398 = vst.msk [vmem:[#allocation2] sm:$0xff] %vm397_vm0, %v1049_v41  ;;  %vm400_vm1 = vcmask 517120  }
   0xd   : > { %908 = vmatpush3.msra.mxu0 %v298_v1  ;;  %v311_v6 = vld [vmem:[%s1379_s1 + $0xe0] sm:$0xff]  ;;  %v310_v8 = vld [vmem:[%s1379_s1 + $0xd8] sm:$0xff]  ;;  %s1136_s28 = scalar_lea.vmem %s1378_s0, %s905_s17  ;;  %v309_v10 = vld [vmem:[%s1379_s1 + $0xd0] sm:$0xff]  ;;  %399 = vst.msk [vmem:[#allocation2 + $0x8] sm:$0xff] %vm397_vm0, %v1049_v41  ;;  %s278_s20 = scalar_lea.vmem %s1385_s7, %s905_s17 }
   0xe   : > { %909 = vmatprep.subr.mxu0 %v313_v2  ;;  %v295_v7 = vld [vmem:[%s1379_s1 + $0x60] sm:$0xff]  ;;  %v294_v9 = vld [vmem:[%s1379_s1 + $0x58] sm:$0xff]  ;;  %v293_v11 = vld [vmem:[%s1379_s1 + $0x50] sm:$0xff]  ;;  %401 = vst.msk [vmem:[#allocation2 + $0x10] sm:$0x3] %vm400_vm1, %v1049_v41 }
   0xf   : > { %910 = vmatpush3.msra.mxu0 %v297_v3  ;;  %v308_v12 = vld [vmem:[%s1379_s1 + $0xc8] sm:$0xff]  ;;  %v307_v15 = vld [vmem:[%s1379_s1 + $0xc0] sm:$0xff]  ;;  %v306_v17 = vld [vmem:[%s1379_s1 + $0xb8] sm:$0xff] }
  0x10   : > { %911 = vmatprep.subr.mxu0 %v312_v4  ;;  %v1148_v13 = vld [vmem:[%s1136_s28 + $0x8] sm:$0xff]  ;;  %v291_v16 = vld [vmem:[%s1379_s1 + $0x40] sm:$0xff]  ;;  %v290_v18 = vld [vmem:[%s1379_s1 + $0x38] sm:$0xff] }
  0x11   : > { %912 = vmatpush3.msra.mxu0 %v296_v5  ;;  %v292_v14 = vld [vmem:[%s1379_s1 + $0x48] sm:$0xff]  ;;  %386 = vmatprep.mubr.f32.mxu0 %v1148_v13  ;;  %v305_v19 = vld [vmem:[%s1379_s1 + $0xb0] sm:$0xff]  ;;  %v303_v23 = vld [vmem:[%s1379_s1 + $0xa0] sm:$0xff] }
  0x12   : > { %913 = vmatprep.subr.mxu0 %v311_v6  ;;  %v289_v20 = vld [vmem:[%s1379_s1 + $0x30] sm:$0xff]  ;;  %v304_v21 = vld [vmem:[%s1379_s1 + $0xa8] sm:$0xff]  ;;  %v287_v24 = vld [vmem:[%s1379_s1 + $0x20] sm:$0xff] }
  0x13   : > { %914 = vmatpush3.msra.mxu0 %v295_v7  ;;  %v288_v22 = vld [vmem:[%s1379_s1 + $0x28] sm:$0xff]  ;;  %v302_v25 = vld [vmem:[%s1379_s1 + $0x98] sm:$0xff]  ;;  %v301_v27 = vld [vmem:[%s1379_s1 + $0x90] sm:$0xff] }
  0x14   : > { %915 = vmatprep.subr.mxu0 %v310_v8  ;;  %v286_v26 = vld [vmem:[%s1379_s1 + $0x18] sm:$0xff]  ;;  %v285_v28 = vld [vmem:[%s1379_s1 + $0x10] sm:$0xff]  ;;  %v300_v29 = vld [vmem:[%s1379_s1 + $0x88] sm:$0xff] }
  0x15   : > { %916 = vmatpush3.msra.mxu0 %v294_v9  ;;  %v284_v30 = vld [vmem:[%s1379_s1 + $0x8] sm:$0xff]  ;;  %v299_v31 = vld [vmem:[%s1379_s1 + $0x80] sm:$0xff]  ;;  %v1212_v34 = vld [vmem:[%s1136_s28 + $0x18] sm:$0xff] }
  0x16   : > { %917 = vmatprep.subr.mxu0 %v309_v10  ;;  %v283_v32 = vld [vmem:[%s1379_s1] sm:$0xff]  ;;  %v1217_v35 = vld [vmem:[%s1136_s28 + $0x10] sm:$0xff]  ;;  %v885_v36 = vld [vmem:[%s1381_s3 + $0x78] sm:$0xff] }
  0x17   : > { %918 = vmatpush3.msra.mxu0 %v293_v11  ;;  %v1209_v33 = vld [vmem:[%s1136_s28] sm:$0xff]  ;;  %975 = vmatprep.subr.mxu1 %v885_v36  ;;  %v884_v37 = vld [vmem:[%s1381_s3 + $0x70] sm:$0xff]  ;;  %v897_v38 = vld [vmem:[%s1381_s3 + $0xb8] sm:$0xff] }
  0x18   : > { %919 = vmatprep.subr.mxu0 %v308_v12  ;;  %976 = vmatpush3.msra.mxu1 %v885_v36  ;;  %v883_v39 = vld [vmem:[%s1381_s3 + $0x68] sm:$0xff]  ;;  %v896_v40 = vld [vmem:[%s1381_s3 + $0xb0] sm:$0xff]  ;;  %v882_v42 = vld [vmem:[%s1381_s3 + $0x60] sm:$0xff] }
  0x19   : > { %920 = vmatpush3.msra.mxu0 %v292_v14  ;;  %977 = vmatprep.subr.mxu1 %v884_v37  ;;  %v895_v43 = vld [vmem:[%s1381_s3 + $0xa8] sm:$0xff]  ;;  %v881_v44 = vld [vmem:[%s1381_s3 + $0x58] sm:$0xff]  ;;  %v894_v45 = vld [vmem:[%s1381_s3 + $0xa0] sm:$0xff] }
  0x1a   : > { %921 = vmatprep.subr.mxu0 %v307_v15  ;;  %978 = vmatpush3.msra.mxu1 %v884_v37  ;;  %v880_v46 = vld [vmem:[%s1381_s3 + $0x50] sm:$0xff]  ;;  %v893_v47 = vld [vmem:[%s1381_s3 + $0x98] sm:$0xff]  ;;  %v879_v48 = vld [vmem:[%s1381_s3 + $0x48] sm:$0xff] }
  0x1b   : > { %922 = vmatpush3.msra.mxu0 %v291_v16  ;;  %979 = vmatprep.subr.mxu1 %v883_v39  ;;  %v892_v49 = vld [vmem:[%s1381_s3 + $0x90] sm:$0xff]  ;;  %v878_v50 = vld [vmem:[%s1381_s3 + $0x40] sm:$0xff]  ;;  %v891_v51 = vld [vmem:[%s1381_s3 + $0x88] sm:$0xff] }
  0x1c   : > { %923 = vmatprep.subr.mxu0 %v306_v17  ;;  %980 = vmatpush3.msra.mxu1 %v883_v39  ;;  %v413_v52 = vld [vmem:[%s1381_s3 + $0x38] sm:$0xff]  ;;  %v890_v53 = vld [vmem:[%s1381_s3 + $0x80] sm:$0xff]  ;;  %v412_v0 = vld [vmem:[%s1381_s3 + $0x30] sm:$0xff] }
  0x1d   : > { %924 = vmatpush3.msra.mxu0 %v290_v18  ;;  %981 = vmatprep.subr.mxu1 %v882_v42  ;;  %v877_v55 = vld [vmem:[%s1380_s2] ss:$0 sm:$0xff]  ;;  %v411_v5 = vld [vmem:[%s1381_s3 + $0x28] sm:$0xff]  ;;  %v409_v7 = vld [vmem:[%s1381_s3 + $0x18] sm:$0xff] }
  0x1e   : > { %925 = vmatprep.subr.mxu0 %v305_v19  ;;  %982 = vmatpush3.msra.mxu1 %v882_v42  ;;  %v410_v6 = vld [vmem:[%s1381_s3 + $0x20] sm:$0xff]  ;;  %v408_v8 = vld [vmem:[%s1381_s3 + $0x10] sm:$0xff]  ;;  %v407_v9 = vld [vmem:[%s1381_s3 + $0x8] sm:$0xff] }
  0x1f   : > { %926 = vmatpush3.msra.mxu0 %v289_v20  ;;  %983 = vmatprep.subr.mxu1 %v881_v44  ;;  %v406_v10 = vld [vmem:[%s1381_s3] sm:$0xff]  ;;  %v705_v12 = vld [vmem:[%s1383_s5 + $0x78] sm:$0xff]  ;;  %v704_v14 = vld [vmem:[%s1383_s5 + $0x70] sm:$0xff] }
  0x20   : > { %927 = vmatprep.subr.mxu0 %v304_v21  ;;  %984 = vmatpush3.msra.mxu1 %v881_v44  ;;  %v703_v15 = vld [vmem:[%s1383_s5 + $0x68] sm:$0xff]  ;;  %v702_v16 = vld [vmem:[%s1383_s5 + $0x60] sm:$0xff]  ;;  %v701_v17 = vld [vmem:[%s1383_s5 + $0x58] sm:$0xff] }
  0x21   : > { %928 = vmatpush3.msra.mxu0 %v288_v22  ;;  %985 = vmatprep.subr.mxu1 %v880_v46  ;;  %v700_v18 = vld [vmem:[%s1383_s5 + $0x50] sm:$0xff]  ;;  %v699_v19 = vld [vmem:[%s1383_s5 + $0x48] sm:$0xff]  ;;  %v698_v20 = vld [vmem:[%s1383_s5 + $0x40] sm:$0xff] }
  0x22   : > { %929 = vmatprep.subr.mxu0 %v303_v23  ;;  %986 = vmatpush3.msra.mxu1 %v880_v46  ;;  %v697_v21 = vld [vmem:[%s1383_s5 + $0x38] sm:$0xff]  ;;  %v696_v22 = vld [vmem:[%s1383_s5 + $0x30] sm:$0xff]  ;;  %v695_v23 = vld [vmem:[%s1383_s5 + $0x28] sm:$0xff]  ;;  %v708_v46 = vlaneseq }
  0x23   : > { %930 = vmatpush3.msra.mxu0 %v287_v24  ;;  %987 = vmatprep.subr.mxu1 %v879_v48  ;;  %v694_v24 = vld [vmem:[%s1383_s5 + $0x20] sm:$0xff] }
  0x24   : > { %931 = vmatprep.subr.mxu0 %v302_v25  ;;  %988 = vmatpush3.msra.mxu1 %v879_v48  ;;  %v693_v25 = vld [vmem:[%s1383_s5 + $0x18] sm:$0xff]  ;;  %v900_v42 = vld [vmem:[%s1382_s4] ss:$0 sm:$0xff] }
  0x25   : > { %932 = vmatpush3.msra.mxu0 %v286_v26  ;;  %989 = vmatprep.subr.mxu1 %v878_v50  ;;  %v692_v26 = vld [vmem:[%s1383_s5 + $0x10] sm:$0xff] }
  0x26   : > { %933 = vmatprep.subr.mxu0 %v301_v27  ;;  %990 = vmatpush3.msra.mxu1 %v878_v50  ;;  %v691_v27 = vld [vmem:[%s1383_s5 + $0x8] sm:$0xff] }
  0x27   : > { %934 = vmatpush3.msra.mxu0 %v285_v28  ;;  %994 = vmatprep.subr.mxu1 %v413_v52  ;;  %v690_v28 = vld [vmem:[%s1383_s5] sm:$0xff] }
  0x28   : > { %935 = vmatprep.subr.mxu0 %v300_v29 }
  0x29   : > { %936 = vmatpush3.msra.mxu0 %v284_v30 }
  0x2a   : > { %937 = vmatprep.subr.mxu0 %v299_v31 }
  0x2b   : > { %938 = vmatpush3.msra.mxu0 %v283_v32 }
  0x2c   : > { %387 = vmatmul.mubr.f32.vlgmr.msra.gmra.mxu0 %v1209_v33  ;;  %1013 = vmatprep.subr.mxu0 %v897_v38 }
  0x2d   : > { %391 = vmatprep.mubr.f32.mxu0 %v1212_v34  ;;  %1014 = vmatpush3.msra.mxu0 %v897_v38 }
  0x2e   : > { %1015 = vmatprep.subr.mxu0 %v896_v40 }
  0x2f   : > { %1016 = vmatpush3.msra.mxu0 %v896_v40 }
  0x30   : > { %392 = vmatmul.mubr.f32.gmra.mxu0 %v1217_v35  ;;  %1017 = vmatprep.subr.mxu0 %v895_v43 }
  0x31   : > { %1018 = vmatpush3.msra.mxu0 %v895_v43 }
  0x32   : > { %1019 = vmatprep.subr.mxu0 %v894_v45 }
  0x33   : > { %1020 = vmatpush3.msra.mxu0 %v894_v45 }
  0x34   : > { %1021 = vmatprep.subr.mxu0 %v893_v47 }
  0x35   : > { %1022 = vmatpush3.msra.mxu0 %v893_v47  ;;  %v709_v47 = vshrl.u32 %v708_v46, 7 }
  0x36   : > { %1023 = vmatprep.subr.mxu0 %v892_v49 }
  0x37   : > { %1024 = vmatpush3.msra.mxu0 %v892_v49  ;;  %v710_v48 = vsub.s32 0, %v709_v47  ;;  %v706_v49 = vld [vmem:[%s1384_s6] sm:$0x3]  ;;  %v714_v50 = vsub.s32 1, %v709_v47 }
  0x38   : > { %1025 = vmatprep.subr.mxu0 %v891_v51 }
  0x39   : > { %1026 = vmatpush3.msra.mxu0 %v891_v51  ;;  %v711_v51 = vrot.slane %v706_v49, %v710_v48 }
  0x3a   : > { %1027 = vmatprep.subr.mxu0 %v890_v53 }
  0x3b   : > { %1028 = vmatpush3.msra.mxu0 %v890_v53 }
  0xec   : > { %v939_v54 = vpop.f32.mrf.mxu0 }
  0xee   : > { %v940_v56 = vpop.f32.mrf.mxu0 }
  0xef   : > { %v941_v57 = vadd.f32 %v940_v56, %v939_v54 }
  0xf0   : > { %v942_v58 = vpop.f32.mrf.mxu0 }
  0xf1   : > { %v389_v59 = vadd.f32 %v941_v57, %v877_v55 }
  0xf2   : > { %v943_v60 = vpop.f32.mrf.mxu0 }
  0xf3   : > { %402 = vst.msk [vmem:[#allocation2 + $0x1] sm:$0xff] %vm397_vm0, %v389_v59  ;;  %v944_v61 = vadd.f32 %v943_v60, %v942_v58 }
  0xf5   : > { %v394_v62 = vadd.f32 %v944_v61, %v877_v55 }
  0xf7   : > { %403 = vst.msk [vmem:[#allocation2 + $0x9] sm:$0xff] %vm397_vm0, %v394_v62 }
  0xfa   : > { %v414_v63 = vld [vmem:[#allocation2 + $0x1] sm:$0xff] }
  0xfb   : > { %991 = vmatprep.mubr.msk.f32.mxu1 %vm397_vm0, %v414_v63  ;;  %v404_v4 = vld [vmem:[#allocation2] sm:$0xff] }
  0xfe   : > { %v415_v1 = vld [vmem:[#allocation2 + $0x9] sm:$0xff] }
  0xff   : > { %v587_v2 = vld [vmem:[#allocation2 + $0x2] sm:$0xff]  ;;  %v588_v3 = vld [vmem:[#allocation2 + $0xa] sm:$0xff]  ;;  %992 = vmatmul.mubr.msk.f32.vlgmr.msra.gmra.mxu1 %vm397_vm0, %v415_v1 }
 0x100   : > { %1029 = vmatprep.mubr.msk.f32.mxu0 %vm397_vm0, %v587_v2  ;;  %995 = vmatpush3.msra.mxu1 %v413_v52  ;;  %v405_v11 = vld [vmem:[#allocation2 + $0x8] sm:$0xff]  ;;  %v715_v52 = vrot.slane %v706_v49, %v714_v50 }
 0x101   : > { %1010 = vmatprep.mubr.msk.f32.mxu1 %vm397_vm0, %v404_v4  ;;  %996 = vmatprep.subr.mxu1 %v412_v0 }
 0x102   : > { %1030 = vmatmul.mubr.msk.f32.vlgmr.msra.gmra.mxu0 %vm397_vm0, %v588_v3  ;;  %997 = vmatpush3.msra.mxu1 %v412_v0 }
 0x103   : > { %998 = vmatprep.subr.mxu1 %v411_v5 }
 0x104   : > { %999 = vmatpush3.msra.mxu1 %v411_v5 }
 0x105   : > { %1000 = vmatprep.subr.mxu1 %v410_v6 }
 0x106   : > { %1001 = vmatpush3.msra.mxu1 %v410_v6 }
 0x107   : > { %1002 = vmatprep.subr.mxu1 %v409_v7 }
 0x108   : > { %1003 = vmatpush3.msra.mxu1 %v409_v7 }
 0x109   : > { %1004 = vmatprep.subr.mxu1 %v408_v8 }
 0x10a   : > { %1005 = vmatpush3.msra.mxu1 %v408_v8 }
 0x10b   : > { %1006 = vmatprep.subr.mxu1 %v407_v9 }
 0x10c   : > { %1007 = vmatpush3.msra.mxu1 %v407_v9 }
 0x10d   : > { %1008 = vmatprep.subr.mxu1 %v406_v10 }
 0x10e   : > { %1009 = vmatpush3.msra.mxu1 %v406_v10 }
 0x10f   : > { %1011 = vmatmul.mubr.msk.f32.vlgmr.msra.gmra.mxu1 %vm397_vm0, %v405_v11  ;;  %740 = vmatprep.subr.mxu1 %v705_v12 }
 0x110   : > { %788 = vmatprep.mubr.f32.mxu1 %v1049_v41  ;;  %741 = vmatpush1.msra.mxu1 %v704_v14 }
 0x111   : > { %742 = vmatprep.subr.mxu1 %v703_v15 }
 0x112   : > { %743 = vmatpush1.msra.mxu1 %v702_v16 }
 0x113   : > { %744 = vmatprep.subr.mxu1 %v701_v17 }
 0x114   : > { %745 = vmatpush1.msra.mxu1 %v700_v18 }
 0x115   : > { %746 = vmatprep.subr.mxu1 %v699_v19 }
 0x116   : > { %747 = vmatpush1.msra.mxu1 %v698_v20 }
 0x117   : > { %748 = vmatprep.subr.mxu1 %v697_v21 }
 0x118   : > { %749 = vmatpush1.msra.mxu1 %v696_v22 }
 0x119   : > { %750 = vmatprep.subr.mxu1 %v695_v23 }
 0x11a   : > { %751 = vmatpush1.msra.mxu1 %v694_v24 }
 0x11b   : > { %752 = vmatprep.subr.mxu1 %v693_v25 }
 0x11c   : > { %753 = vmatpush1.msra.mxu1 %v692_v26 }
 0x11d   : > { %754 = vmatprep.subr.mxu1 %v691_v27 }
 0x11e   : > { %755 = vmatpush1.msra.mxu1 %v690_v28 }
 0x1bf   : > { %v993_v29 = vpop.f32.mrf.mxu1 }
 0x1c1   : > { %v497_v30 = vpop.f32.mrf.mxu1 }
 0x1c2   : > { %v1031_v31 = vpop.f32.mrf.mxu0 }
 0x1c4   : > { %v670_v39 = vpop.f32.mrf.mxu0 }
 0x1cf   : > { %v1012_v32 = vpop.f32.mrf.mxu1 }
 0x1d0   : > { %v584_v37 = vadd.f32 %v1012_v32, %v993_v29 }
 0x1d1   : > { %v578_v36 = vpop.f32.mrf.mxu1 }
 0x1d2   : > { %v579_v38 = vadd.f32 %v578_v36, %v497_v30  ;;  %v680_v43 = vadd.f32 %v1031_v31, %v584_v37 }
 0x1d4   : > { %v679_v40 = vadd.f32 %v670_v39, %v579_v38  ;;  %v689_v45 = vadd.f32 %v900_v42, %v680_v43 }
 0x1d6   : > { %v688_v44 = vadd.f32 %v900_v42, %v679_v40 }
 0x1d8   : > { %901 = vmatmul.mubr.msk.f32.vlgmr.msra.gmra.mxu1 %vm397_vm0, %v688_v44 }
 0x1d9   : > { %794 = vmatprep.mubr.f32.mxu1 %v1049_v41 }
 0x1dc   : > { %902 = vmatmul.mubr.msk.f32.gmra.mxu1 %vm397_vm0, %v689_v45 }
 0x298   : > { %v790_v53 = vpop.f32.mrf.mxu1 }
 0x299   : > { %v791_v54 = vadd.f32 %v790_v53, %v711_v51 }
 0x29a   : > { %v792_v55 = vpop.f32.mrf.mxu1 }
 0x29b   : > { %v801_v56 = vadd.f32 %v791_v54, %v1209_v33  ;;  %v793_v57 = vadd.f32 %v792_v55, %v715_v52 }
 0x29c   : > { %v796_v41 = vpop.f32.mrf.mxu1 }
 0x29d   : > { %v805_v58 = vmax.f32 %v801_v56, 0.0  ;;  %v802_v59 = vadd.f32 %v793_v57, %v1148_v13  ;;  %v797_v60 = vadd.f32 %v796_v41, %v711_v51 }
 0x29e   : > { %v798_v61 = vpop.f32.mrf.mxu1 }
 0x29f   : > { %809 = vst [vmem:[%s278_s20] sm:$0xff] %v805_v58  ;;  %v806_v62 = vmax.f32 %v802_v59, 0.0  ;;  %v803_v63 = vadd.f32 %v797_v60, %v1217_v35  ;;  %v799_v0 = vadd.f32 %v798_v61, %v715_v52 }
 0x2a1   : > { %810 = vst [vmem:[%s278_s20 + $0x8] sm:$0xff] %v806_v62  ;;  %v807_v1 = vmax.f32 %v803_v63, 0.0  ;;  %v804_v33 = vadd.f32 %v799_v0, %v1212_v34 }
 0x2a3   : > { %811 = vst [vmem:[%s278_s20 + $0x10] sm:$0xff] %v807_v1  ;;  %v808_v2 = vmax.f32 %v804_v33, 0.0 }
 0x2a5   : > { %812 = vst [vmem:[%s278_s20 + $0x18] sm:$0xff] %v808_v2 }
 0x2a6 PF: > { %s17_s24 = sadd.s32 1, %s1047_s24  }
 0x2a7   : > { %p14_p4 = scmp.ge.s32.totalorder %s17_s24, 4  }
 0x2a9   :  { %16 = sbr.rel (!%p14_p4) target bundleno = 1 (0x1), region = 80 }

</bundles_post_ra>
